<compile_context>
chip_gen: v6e
topology: v6e:2x2x1
jax: 0.10.0
libtpu: 0.0.40
codegen_flags: <defaults>
</compile_context>

<pallas_src>
import math

import jax
import jax.numpy as jnp
from jax.experimental import pallas as pl
from jax.experimental.pallas import tpu as pltpu

BP = 8  # padded batch rows = one sublane tile


def _lstm_kernel(x_ref, fx_ref, wx_ref, b_ref, wh_ref,
                 wfc_h_ref, wfc_f_ref, bfc_ref,
                 out_ref, gx_scr):
    """Full LSTM forward (all T steps) in a single kernel invocation."""
    H = wh_ref.shape[0]
    T = gx_scr.shape[0] // BP

    # ---- prologue: hoisted input projection, ONE matmul for all timesteps ----
    gx_scr[...] = (jnp.dot(x_ref[...], wx_ref[...],
                           preferred_element_type=jnp.float32)
                   + b_ref[...])                       # (T*BP, 4H), bias = bx+bh

    wh = wh_ref[...]                                   # (H, 4H), loop-invariant RHS

    # Hoisted single-tanh activation constants.
    # sigmoid lanes ([0,2H) u [3H,4H)): act = 0.5*tanh(0.5*g) + 0.5
    # cell lanes    ([2H,3H)):          act = tanh(g)
    lane = jax.lax.broadcasted_iota(jnp.int32, (BP, 4 * H), 1)
    is_cell = (lane >= 2 * H) & (lane < 3 * H)
    pre = jnp.where(is_cell, 1.0, 0.5).astype(jnp.float32)    # also the post-mul
    post_b = jnp.where(is_cell, 0.0, 0.5).astype(jnp.float32)

    def step(t, carry):
        h_prev, c_prev = carry
        row = pl.multiple_of(t * BP, BP)               # sublane-aligned slice
        g = (gx_scr[pl.ds(row, BP), :]                 # precomputed x-projection
             + jnp.dot(h_prev, wh, preferred_element_type=jnp.float32))  # (BP,4H)
        # Single full-vreg tanh + affine fixup covers both sigmoid & tanh gates.
        act = jnp.tanh(g * pre) * pre + post_b
        i_g = act[:, 0 * H:1 * H]
        f_g = act[:, 1 * H:2 * H]
        c_g = act[:, 2 * H:3 * H]
        o_g = act[:, 3 * H:4 * H]
        c_new = c_prev * f_g + i_g * c_g
        h_new = o_g * jnp.tanh(c_new)
        return h_new, c_new

    h0 = jnp.zeros((BP, H), jnp.float32)
    c0 = jnp.zeros((BP, H), jnp.float32)
    h_fin, _ = jax.lax.fori_loop(0, T, step, (h0, c0), unroll=True)

    # ---- epilogue: fc over concat([h_T, fx]) split into (H,od) + (1,od) ----
    out_ref[...] = (jnp.dot(h_fin, wfc_h_ref[...],
                            preferred_element_type=jnp.float32)
                    + fx_ref[...] * wfc_f_ref[...]
                    + bfc_ref[...])


def prepare_params(params):
    """One-time weight plumbing (hoisted out of the per-call forward)."""
    wx, bx, wh, bh, wfc, bfc = params
    H = wh.shape[1]
    wx_t = wx.T                                   # (D, 4H)
    wh_t = wh.T                                   # (H, 4H)
    bias = (bx + bh).reshape(1, 4 * H)            # pre-summed bias
    wfc_h = wfc[:, :H].T                          # (H, out_dim)
    wfc_f = wfc[:, H:].T                          # (1, out_dim)
    bfc2 = bfc.reshape(1, -1)                     # (1, out_dim)
    return wx_t, bias, wh_t, wfc_h, wfc_f, bfc2


def _forward_impl(x, fx, prepared):
    """x: (B, T, D) f32, fx: (B, 1) f32 -> (B, out_dim) f32."""
    wx_t, bias, wh_t, wfc_h, wfc_f, bfc2 = prepared
    B, T, D = x.shape
    H = wh_t.shape[0]
    out_dim = wfc_h.shape[1]

    # Time-major layout padded to 8 sublanes per step: row index = t*BP + b.
    x_tm = jnp.swapaxes(x, 0, 1)                          # (T, B, D)
    x_tm = jnp.pad(x_tm, ((0, 0), (0, BP - B), (0, 0)))   # (T, BP, D)
    x_tm = x_tm.reshape(T * BP, D)
    fx_pad = jnp.pad(fx, ((0, BP - B), (0, 0)))           # (BP, 1)

    grid_spec = pltpu.PrefetchScalarGridSpec(
        num_scalar_prefetch=0,
        grid=(1,),                                        # single invocation
        in_specs=[
            pl.BlockSpec((T * BP, D), lambda i: (0, 0)),      # x (time-major, padded)
            pl.BlockSpec((BP, 1), lambda i: (0, 0)),          # fx (padded)
            pl.BlockSpec((D, 4 * H), lambda i: (0, 0)),       # Wx^T
            pl.BlockSpec((1, 4 * H), lambda i: (0, 0)),       # bx + bh
            pl.BlockSpec((H, 4 * H), lambda i: (0, 0)),       # Wh^T
            pl.BlockSpec((H, out_dim), lambda i: (0, 0)),     # Wfc (hidden part)
            pl.BlockSpec((1, out_dim), lambda i: (0, 0)),     # Wfc (fx part)
            pl.BlockSpec((1, out_dim), lambda i: (0, 0)),     # bfc
        ],
        out_specs=pl.BlockSpec((BP, out_dim), lambda i: (0, 0)),
        scratch_shapes=[
            pltpu.VMEM((T * BP, 4 * H), jnp.float32),  # hoisted input projection
        ],
    )

    out_pad = pl.pallas_call(
        _lstm_kernel,
        out_shape=jax.ShapeDtypeStruct((BP, out_dim), jnp.float32),
        grid_spec=grid_spec,
        compiler_params=pltpu.CompilerParams(
            dimension_semantics=("arbitrary",)),
    )(x_tm, fx_pad, wx_t, bias, wh_t, wfc_h, wfc_f, bfc2)

    return out_pad[:B]                                    # drop padded rows


# One jitted forward: layout prep + kernel + final slice fuse into one dispatch.
my_lstm_forward = jax.jit(_forward_impl)


def init_params(key, input_dim, hidden_dim, output_dim):
    """Deterministic init matching the PyTorch module's parameter shapes."""
    k = jax.random.split(key, 6)
    std = 1.0 / math.sqrt(hidden_dim)
    wx = jax.random.uniform(k[0], (4 * hidden_dim, input_dim), jnp.float32, -std, std)
    bx = jax.random.uniform(k[1], (4 * hidden_dim,), jnp.float32, -std, std)
    wh = jax.random.uniform(k[2], (4 * hidden_dim, hidden_dim), jnp.float32, -std, std)
    bh = jax.random.uniform(k[3], (4 * hidden_dim,), jnp.float32, -std, std)
    fc_std = 1.0 / math.sqrt(hidden_dim + 1)
    wfc = jax.random.uniform(k[4], (output_dim, hidden_dim + 1), jnp.float32, -fc_std, fc_std)
    bfc = jax.random.uniform(k[5], (output_dim,), jnp.float32, -fc_std, fc_std)
    return wx, bx, wh, bh, wfc, bfc


def reference_forward(x, fx, params):
    """Pure-JAX reference mirroring the PyTorch forward (dropout is unused)."""
    wx, bx, wh, bh, wfc, bfc = params
    B, T, D = x.shape
    H = wh.shape[1]
    h = jnp.zeros((B, H), jnp.float32)
    c = jnp.zeros((B, H), jnp.float32)
    for t in range(T):
        gates = x[:, t, :] @ wx.T + bx + h @ wh.T + bh
        i, f, g, o = jnp.split(gates, 4, axis=1)
        c = c * jax.nn.sigmoid(f) + jax.nn.sigmoid(i) * jnp.tanh(g)
        h = jax.nn.sigmoid(o) * jnp.tanh(c)
    out = jnp.concatenate([h, fx], axis=1)
    return out @ wfc.T + bfc


if __name__ == "__main__":
    # my_lstm(hidden_dim=32, layer_dim=1, input_dim=3, output_dim=1)
    B, T, D, H, OUT = 2, 8, 3, 32, 1

    key = jax.random.PRNGKey(0)
    kx, kf, kp = jax.random.split(key, 3)
    x = jax.random.normal(kx, (B, T, D), jnp.float32)
    fx = jax.random.normal(kf, (B, 1), jnp.float32)
    params = init_params(kp, D, H, OUT)
    prepared = prepare_params(params)          # one-time weight plumbing

    out = my_lstm_forward(x, fx, prepared)
    out = jax.block_until_ready(out)

    ref = reference_forward(x, fx, params)
    assert out.shape == (B, OUT)
    assert jnp.allclose(out, ref, atol=1e-5, rtol=1e-5)

    print("KERNEL_OK")
</pallas_src>

<mosaic_0001>
module attributes {stable_mosaic.version = 11 : i64} {
  func.func @_lstm_kernel(%arg0: i32, %arg1: memref<64x3xf32, #tpu.memory_space<vmem>>, %arg2: memref<8x1xf32, #tpu.memory_space<vmem>>, %arg3: memref<3x128xf32, #tpu.memory_space<vmem>>, %arg4: memref<1x128xf32, #tpu.memory_space<vmem>>, %arg5: memref<32x128xf32, #tpu.memory_space<vmem>>, %arg6: memref<32x1xf32, #tpu.memory_space<vmem>>, %arg7: memref<1x1xf32, #tpu.memory_space<vmem>>, %arg8: memref<1x1xf32, #tpu.memory_space<vmem>>, %arg9: memref<8x1xf32, #tpu.memory_space<vmem>>, %arg10: memref<64x128xf32, #tpu.memory_space<vmem>>) attributes {dimension_semantics = [#tpu.dimension_semantics<arbitrary>], iteration_bounds = array<i64: 1>, scalar_prefetch = 0 : i64, scratch_operands = 1 : i64, tpu.core_type = #tpu.core_type<tc>, window_params = [{pipeline_mode = #tpu.pipeline_mode<synchronous>, transform_indices = @transform_0, window_bounds = array<i64: 64, 3>}, {pipeline_mode = #tpu.pipeline_mode<synchronous>, transform_indices = @transform_1, window_bounds = array<i64: 8, 1>}, {pipeline_mode = #tpu.pipeline_mode<synchronous>, transform_indices = @transform_2, window_bounds = array<i64: 3, 128>}, {pipeline_mode = #tpu.pipeline_mode<synchronous>, transform_indices = @transform_3, window_bounds = array<i64: 1, 128>}, {pipeline_mode = #tpu.pipeline_mode<synchronous>, transform_indices = @transform_4, window_bounds = array<i64: 32, 128>}, {pipeline_mode = #tpu.pipeline_mode<synchronous>, transform_indices = @transform_5, window_bounds = array<i64: 32, 1>}, {pipeline_mode = #tpu.pipeline_mode<synchronous>, transform_indices = @transform_6, window_bounds = array<i64: 1, 1>}, {pipeline_mode = #tpu.pipeline_mode<synchronous>, transform_indices = @transform_7, window_bounds = array<i64: 1, 1>}, {pipeline_mode = #tpu.pipeline_mode<synchronous>, transform_indices = @transform_8, window_bounds = array<i64: 8, 1>}]} {
    %c0 = arith.constant 0 : index
    %c0_0 = arith.constant 0 : index
    %0 = vector.load %arg1[%c0, %c0_0] : memref<64x3xf32, #tpu.memory_space<vmem>>, vector<64x3xf32>
    %c0_1 = arith.constant 0 : index
    %c0_2 = arith.constant 0 : index
    %1 = vector.load %arg3[%c0_1, %c0_2] : memref<3x128xf32, #tpu.memory_space<vmem>>, vector<3x128xf32>
    %cst = arith.constant dense<0.000000e+00> : vector<64x128xf32>
    %2 = tpu.matmul %0, %1, %cst {dimension_numbers = #tpu.dot_dimension_numbers<[1], [0], [0], [1], [0, 0, 1, 1], [], []>} : vector<64x3xf32>, vector<3x128xf32>, vector<64x128xf32> -> vector<64x128xf32>
    %c0_3 = arith.constant 0 : index
    %c0_4 = arith.constant 0 : index
    %3 = vector.load %arg4[%c0_3, %c0_4] : memref<1x128xf32, #tpu.memory_space<vmem>>, vector<1x128xf32>
    %4 = vector.broadcast %3 : vector<1x128xf32> to vector<64x128xf32>
    %5 = arith.addf %2, %4 : vector<64x128xf32>
    %c0_5 = arith.constant 0 : index
    %c0_6 = arith.constant 0 : index
    %6 = vector.load %arg10[%c0_5, %c0_6] : memref<64x128xf32, #tpu.memory_space<vmem>>, vector<64x128xf32>
    tpu.vector_store %arg10[%c0_5, %c0_6], %5 {strides = array<i32>} : memref<64x128xf32, #tpu.memory_space<vmem>>, vector<64x128xf32>,
    %c0_7 = arith.constant 0 : index
    %c0_8 = arith.constant 0 : index
    %7 = vector.load %arg5[%c0_7, %c0_8] : memref<32x128xf32, #tpu.memory_space<vmem>>, vector<32x128xf32>
    %8 = tpu.iota {dimensions = array<i32: 1>} : vector<8x128xi32>
    %c64_i32 = arith.constant 64 : i32
    %9 = vector.broadcast %c64_i32 : i32 to vector<8x128xi32>
    %10 = arith.cmpi sge, %8, %9 : vector<8x128xi32>
    %c96_i32 = arith.constant 96 : i32
    %11 = vector.broadcast %c96_i32 : i32 to vector<8x128xi32>
    %12 = arith.cmpi slt, %8, %11 : vector<8x128xi32>
    %13 = arith.andi %10, %12 : vector<8x128xi1>
    %cst_9 = arith.constant 1.000000e+00 : f32
    %cst_10 = arith.constant 5.000000e-01 : f32
    %14 = vector.broadcast %cst_9 : f32 to vector<8x128xf32>
    %15 = vector.broadcast %cst_10 : f32 to vector<8x128xf32>
    %16 = arith.select %13, %14, %15 : vector<8x128xi1>, vector<8x128xf32>
    %cst_11 = arith.constant 0.000000e+00 : f32
    %cst_12 = arith.constant 5.000000e-01 : f32
    %17 = vector.broadcast %cst_11 : f32 to vector<8x128xf32>
    %18 = vector.broadcast %cst_12 : f32 to vector<8x128xf32>
    %19 = arith.select %13, %17, %18 : vector<8x128xi1>, vector<8x128xf32>
    %cst_13 = arith.constant 0.000000e+00 : f32
    %20 = vector.broadcast %cst_13 : f32 to vector<8x32xf32>
    %cst_14 = arith.constant 0.000000e+00 : f32
    %21 = vector.broadcast %cst_14 : f32 to vector<8x32xf32>
    %c0_i32 = arith.constant 0 : i32
    %c8_i32 = arith.constant 8 : i32
    %22 = arith.muli %c0_i32, %c8_i32 : i32
    %23 = tpu.assume_multiple %22, 8 : i32
    %24 = arith.index_cast %23 : i32 to index
    %c0_15 = arith.constant 0 : index
    %25 = vector.load %arg10[%24, %c0_15] : memref<64x128xf32, #tpu.memory_space<vmem>>, vector<8x128xf32>
    %cst_16 = arith.constant dense<0.000000e+00> : vector<8x128xf32>
    %26 = tpu.matmul %20, %7, %cst_16 {dimension_numbers = #tpu.dot_dimension_numbers<[1], [0], [0], [1], [0, 0, 1, 1], [], []>} : vector<8x32xf32>, vector<32x128xf32>, vector<8x128xf32> -> vector<8x128xf32>
    %27 = arith.addf %25, %26 : vector<8x128xf32>
    %28 = arith.mulf %27, %16 : vector<8x128xf32>
    %29 = math.tanh %28 : vector<8x128xf32>
    %30 = arith.mulf %29, %16 : vector<8x128xf32>
    %31 = arith.addf %30, %19 : vector<8x128xf32>
    %32 = vector.extract_strided_slice %31 {offsets = [0, 0], sizes = [8, 32], strides = [1, 1]} : vector<8x128xf32> to vector<8x32xf32>
    %33 = vector.extract_strided_slice %31 {offsets = [0, 32], sizes = [8, 32], strides = [1, 1]} : vector<8x128xf32> to vector<8x32xf32>
    %34 = vector.extract_strided_slice %31 {offsets = [0, 64], sizes = [8, 32], strides = [1, 1]} : vector<8x128xf32> to vector<8x32xf32>
    %35 = vector.extract_strided_slice %31 {offsets = [0, 96], sizes = [8, 32], strides = [1, 1]} : vector<8x128xf32> to vector<8x32xf32>
    %36 = arith.mulf %21, %33 : vector<8x32xf32>
    %37 = arith.mulf %32, %34 : vector<8x32xf32>
    %38 = arith.addf %36, %37 : vector<8x32xf32>
    %39 = math.tanh %38 : vector<8x32xf32>
    %40 = arith.mulf %35, %39 : vector<8x32xf32>
    %c1_i32 = arith.constant 1 : i32
    %c8_i32_17 = arith.constant 8 : i32
    %41 = arith.muli %c1_i32, %c8_i32_17 : i32
    %42 = tpu.assume_multiple %41, 8 : i32
    %43 = arith.index_cast %42 : i32 to index
    %c0_18 = arith.constant 0 : index
    %44 = vector.load %arg10[%43, %c0_18] : memref<64x128xf32, #tpu.memory_space<vmem>>, vector<8x128xf32>
    %cst_19 = arith.constant dense<0.000000e+00> : vector<8x128xf32>
    %45 = tpu.matmul %40, %7, %cst_19 {dimension_numbers = #tpu.dot_dimension_numbers<[1], [0], [0], [1], [0, 0, 1, 1], [], []>} : vector<8x32xf32>, vector<32x128xf32>, vector<8x128xf32> -> vector<8x128xf32>
    %46 = arith.addf %44, %45 : vector<8x128xf32>
    %47 = arith.mulf %46, %16 : vector<8x128xf32>
    %48 = math.tanh %47 : vector<8x128xf32>
    %49 = arith.mulf %48, %16 : vector<8x128xf32>
    %50 = arith.addf %49, %19 : vector<8x128xf32>
    %51 = vector.extract_strided_slice %50 {offsets = [0, 0], sizes = [8, 32], strides = [1, 1]} : vector<8x128xf32> to vector<8x32xf32>
    %52 = vector.extract_strided_slice %50 {offsets = [0, 32], sizes = [8, 32], strides = [1, 1]} : vector<8x128xf32> to vector<8x32xf32>
    %53 = vector.extract_strided_slice %50 {offsets = [0, 64], sizes = [8, 32], strides = [1, 1]} : vector<8x128xf32> to vector<8x32xf32>
    %54 = vector.extract_strided_slice %50 {offsets = [0, 96], sizes = [8, 32], strides = [1, 1]} : vector<8x128xf32> to vector<8x32xf32>
    %55 = arith.mulf %38, %52 : vector<8x32xf32>
    %56 = arith.mulf %51, %53 : vector<8x32xf32>
    %57 = arith.addf %55, %56 : vector<8x32xf32>
    %58 = math.tanh %57 : vector<8x32xf32>
    %59 = arith.mulf %54, %58 : vector<8x32xf32>
    %c2_i32 = arith.constant 2 : i32
    %c8_i32_20 = arith.constant 8 : i32
    %60 = arith.muli %c2_i32, %c8_i32_20 : i32
    %61 = tpu.assume_multiple %60, 8 : i32
    %62 = arith.index_cast %61 : i32 to index
    %c0_21 = arith.constant 0 : index
    %63 = vector.load %arg10[%62, %c0_21] : memref<64x128xf32, #tpu.memory_space<vmem>>, vector<8x128xf32>
    %cst_22 = arith.constant dense<0.000000e+00> : vector<8x128xf32>
    %64 = tpu.matmul %59, %7, %cst_22 {dimension_numbers = #tpu.dot_dimension_numbers<[1], [0], [0], [1], [0, 0, 1, 1], [], []>} : vector<8x32xf32>, vector<32x128xf32>, vector<8x128xf32> -> vector<8x128xf32>
    %65 = arith.addf %63, %64 : vector<8x128xf32>
    %66 = arith.mulf %65, %16 : vector<8x128xf32>
    %67 = math.tanh %66 : vector<8x128xf32>
    %68 = arith.mulf %67, %16 : vector<8x128xf32>
    %69 = arith.addf %68, %19 : vector<8x128xf32>
    %70 = vector.extract_strided_slice %69 {offsets = [0, 0], sizes = [8, 32], strides = [1, 1]} : vector<8x128xf32> to vector<8x32xf32>
    %71 = vector.extract_strided_slice %69 {offsets = [0, 32], sizes = [8, 32], strides = [1, 1]} : vector<8x128xf32> to vector<8x32xf32>
    %72 = vector.extract_strided_slice %69 {offsets = [0, 64], sizes = [8, 32], strides = [1, 1]} : vector<8x128xf32> to vector<8x32xf32>
    %73 = vector.extract_strided_slice %69 {offsets = [0, 96], sizes = [8, 32], strides = [1, 1]} : vector<8x128xf32> to vector<8x32xf32>
    %74 = arith.mulf %57, %71 : vector<8x32xf32>
    %75 = arith.mulf %70, %72 : vector<8x32xf32>
    %76 = arith.addf %74, %75 : vector<8x32xf32>
    %77 = math.tanh %76 : vector<8x32xf32>
    %78 = arith.mulf %73, %77 : vector<8x32xf32>
    %c3_i32 = arith.constant 3 : i32
    %c8_i32_23 = arith.constant 8 : i32
    %79 = arith.muli %c3_i32, %c8_i32_23 : i32
    %80 = tpu.assume_multiple %79, 8 : i32
    %81 = arith.index_cast %80 : i32 to index
    %c0_24 = arith.constant 0 : index
    %82 = vector.load %arg10[%81, %c0_24] : memref<64x128xf32, #tpu.memory_space<vmem>>, vector<8x128xf32>
    %cst_25 = arith.constant dense<0.000000e+00> : vector<8x128xf32>
    %83 = tpu.matmul %78, %7, %cst_25 {dimension_numbers = #tpu.dot_dimension_numbers<[1], [0], [0], [1], [0, 0, 1, 1], [], []>} : vector<8x32xf32>, vector<32x128xf32>, vector<8x128xf32> -> vector<8x128xf32>
    %84 = arith.addf %82, %83 : vector<8x128xf32>
    %85 = arith.mulf %84, %16 : vector<8x128xf32>
    %86 = math.tanh %85 : vector<8x128xf32>
    %87 = arith.mulf %86, %16 : vector<8x128xf32>
    %88 = arith.addf %87, %19 : vector<8x128xf32>
    %89 = vector.extract_strided_slice %88 {offsets = [0, 0], sizes = [8, 32], strides = [1, 1]} : vector<8x128xf32> to vector<8x32xf32>
    %90 = vector.extract_strided_slice %88 {offsets = [0, 32], sizes = [8, 32], strides = [1, 1]} : vector<8x128xf32> to vector<8x32xf32>
    %91 = vector.extract_strided_slice %88 {offsets = [0, 64], sizes = [8, 32], strides = [1, 1]} : vector<8x128xf32> to vector<8x32xf32>
    %92 = vector.extract_strided_slice %88 {offsets = [0, 96], sizes = [8, 32], strides = [1, 1]} : vector<8x128xf32> to vector<8x32xf32>
    %93 = arith.mulf %76, %90 : vector<8x32xf32>
    %94 = arith.mulf %89, %91 : vector<8x32xf32>
    %95 = arith.addf %93, %94 : vector<8x32xf32>
    %96 = math.tanh %95 : vector<8x32xf32>
    %97 = arith.mulf %92, %96 : vector<8x32xf32>
    %c4_i32 = arith.constant 4 : i32
    %c8_i32_26 = arith.constant 8 : i32
    %98 = arith.muli %c4_i32, %c8_i32_26 : i32
    %99 = tpu.assume_multiple %98, 8 : i32
    %100 = arith.index_cast %99 : i32 to index
    %c0_27 = arith.constant 0 : index
    %101 = vector.load %arg10[%100, %c0_27] : memref<64x128xf32, #tpu.memory_space<vmem>>, vector<8x128xf32>
    %cst_28 = arith.constant dense<0.000000e+00> : vector<8x128xf32>
    %102 = tpu.matmul %97, %7, %cst_28 {dimension_numbers = #tpu.dot_dimension_numbers<[1], [0], [0], [1], [0, 0, 1, 1], [], []>} : vector<8x32xf32>, vector<32x128xf32>, vector<8x128xf32> -> vector<8x128xf32>
    %103 = arith.addf %101, %102 : vector<8x128xf32>
    %104 = arith.mulf %103, %16 : vector<8x128xf32>
    %105 = math.tanh %104 : vector<8x128xf32>
    %106 = arith.mulf %105, %16 : vector<8x128xf32>
    %107 = arith.addf %106, %19 : vector<8x128xf32>
    %108 = vector.extract_strided_slice %107 {offsets = [0, 0], sizes = [8, 32], strides = [1, 1]} : vector<8x128xf32> to vector<8x32xf32>
    %109 = vector.extract_strided_slice %107 {offsets = [0, 32], sizes = [8, 32], strides = [1, 1]} : vector<8x128xf32> to vector<8x32xf32>
    %110 = vector.extract_strided_slice %107 {offsets = [0, 64], sizes = [8, 32], strides = [1, 1]} : vector<8x128xf32> to vector<8x32xf32>
    %111 = vector.extract_strided_slice %107 {offsets = [0, 96], sizes = [8, 32], strides = [1, 1]} : vector<8x128xf32> to vector<8x32xf32>
    %112 = arith.mulf %95, %109 : vector<8x32xf32>
    %113 = arith.mulf %108, %110 : vector<8x32xf32>
    %114 = arith.addf %112, %113 : vector<8x32xf32>
    %115 = math.tanh %114 : vector<8x32xf32>
    %116 = arith.mulf %111, %115 : vector<8x32xf32>
    %c5_i32 = arith.constant 5 : i32
    %c8_i32_29 = arith.constant 8 : i32
    %117 = arith.muli %c5_i32, %c8_i32_29 : i32
    %118 = tpu.assume_multiple %117, 8 : i32
    %119 = arith.index_cast %118 : i32 to index
    %c0_30 = arith.constant 0 : index
    %120 = vector.load %arg10[%119, %c0_30] : memref<64x128xf32, #tpu.memory_space<vmem>>, vector<8x128xf32>
    %cst_31 = arith.constant dense<0.000000e+00> : vector<8x128xf32>
    %121 = tpu.matmul %116, %7, %cst_31 {dimension_numbers = #tpu.dot_dimension_numbers<[1], [0], [0], [1], [0, 0, 1, 1], [], []>} : vector<8x32xf32>, vector<32x128xf32>, vector<8x128xf32> -> vector<8x128xf32>
    %122 = arith.addf %120, %121 : vector<8x128xf32>
    %123 = arith.mulf %122, %16 : vector<8x128xf32>
    %124 = math.tanh %123 : vector<8x128xf32>
    %125 = arith.mulf %124, %16 : vector<8x128xf32>
    %126 = arith.addf %125, %19 : vector<8x128xf32>
    %127 = vector.extract_strided_slice %126 {offsets = [0, 0], sizes = [8, 32], strides = [1, 1]} : vector<8x128xf32> to vector<8x32xf32>
    %128 = vector.extract_strided_slice %126 {offsets = [0, 32], sizes = [8, 32], strides = [1, 1]} : vector<8x128xf32> to vector<8x32xf32>
    %129 = vector.extract_strided_slice %126 {offsets = [0, 64], sizes = [8, 32], strides = [1, 1]} : vector<8x128xf32> to vector<8x32xf32>
    %130 = vector.extract_strided_slice %126 {offsets = [0, 96], sizes = [8, 32], strides = [1, 1]} : vector<8x128xf32> to vector<8x32xf32>
    %131 = arith.mulf %114, %128 : vector<8x32xf32>
    %132 = arith.mulf %127, %129 : vector<8x32xf32>
    %133 = arith.addf %131, %132 : vector<8x32xf32>
    %134 = math.tanh %133 : vector<8x32xf32>
    %135 = arith.mulf %130, %134 : vector<8x32xf32>
    %c6_i32 = arith.constant 6 : i32
    %c8_i32_32 = arith.constant 8 : i32
    %136 = arith.muli %c6_i32, %c8_i32_32 : i32
    %137 = tpu.assume_multiple %136, 8 : i32
    %138 = arith.index_cast %137 : i32 to index
    %c0_33 = arith.constant 0 : index
    %139 = vector.load %arg10[%138, %c0_33] : memref<64x128xf32, #tpu.memory_space<vmem>>, vector<8x128xf32>
    %cst_34 = arith.constant dense<0.000000e+00> : vector<8x128xf32>
    %140 = tpu.matmul %135, %7, %cst_34 {dimension_numbers = #tpu.dot_dimension_numbers<[1], [0], [0], [1], [0, 0, 1, 1], [], []>} : vector<8x32xf32>, vector<32x128xf32>, vector<8x128xf32> -> vector<8x128xf32>
    %141 = arith.addf %139, %140 : vector<8x128xf32>
    %142 = arith.mulf %141, %16 : vector<8x128xf32>
    %143 = math.tanh %142 : vector<8x128xf32>
    %144 = arith.mulf %143, %16 : vector<8x128xf32>
    %145 = arith.addf %144, %19 : vector<8x128xf32>
    %146 = vector.extract_strided_slice %145 {offsets = [0, 0], sizes = [8, 32], strides = [1, 1]} : vector<8x128xf32> to vector<8x32xf32>
    %147 = vector.extract_strided_slice %145 {offsets = [0, 32], sizes = [8, 32], strides = [1, 1]} : vector<8x128xf32> to vector<8x32xf32>
    %148 = vector.extract_strided_slice %145 {offsets = [0, 64], sizes = [8, 32], strides = [1, 1]} : vector<8x128xf32> to vector<8x32xf32>
    %149 = vector.extract_strided_slice %145 {offsets = [0, 96], sizes = [8, 32], strides = [1, 1]} : vector<8x128xf32> to vector<8x32xf32>
    %150 = arith.mulf %133, %147 : vector<8x32xf32>
    %151 = arith.mulf %146, %148 : vector<8x32xf32>
    %152 = arith.addf %150, %151 : vector<8x32xf32>
    %153 = math.tanh %152 : vector<8x32xf32>
    %154 = arith.mulf %149, %153 : vector<8x32xf32>
    %c7_i32 = arith.constant 7 : i32
    %c8_i32_35 = arith.constant 8 : i32
    %155 = arith.muli %c7_i32, %c8_i32_35 : i32
    %156 = tpu.assume_multiple %155, 8 : i32
    %157 = arith.index_cast %156 : i32 to index
    %c0_36 = arith.constant 0 : index
    %158 = vector.load %arg10[%157, %c0_36] : memref<64x128xf32, #tpu.memory_space<vmem>>, vector<8x128xf32>
    %cst_37 = arith.constant dense<0.000000e+00> : vector<8x128xf32>
    %159 = tpu.matmul %154, %7, %cst_37 {dimension_numbers = #tpu.dot_dimension_numbers<[1], [0], [0], [1], [0, 0, 1, 1], [], []>} : vector<8x32xf32>, vector<32x128xf32>, vector<8x128xf32> -> vector<8x128xf32>
    %160 = arith.addf %158, %159 : vector<8x128xf32>
    %161 = arith.mulf %160, %16 : vector<8x128xf32>
    %162 = math.tanh %161 : vector<8x128xf32>
    %163 = arith.mulf %162, %16 : vector<8x128xf32>
    %164 = arith.addf %163, %19 : vector<8x128xf32>
    %165 = vector.extract_strided_slice %164 {offsets = [0, 0], sizes = [8, 32], strides = [1, 1]} : vector<8x128xf32> to vector<8x32xf32>
    %166 = vector.extract_strided_slice %164 {offsets = [0, 32], sizes = [8, 32], strides = [1, 1]} : vector<8x128xf32> to vector<8x32xf32>
    %167 = vector.extract_strided_slice %164 {offsets = [0, 64], sizes = [8, 32], strides = [1, 1]} : vector<8x128xf32> to vector<8x32xf32>
    %168 = vector.extract_strided_slice %164 {offsets = [0, 96], sizes = [8, 32], strides = [1, 1]} : vector<8x128xf32> to vector<8x32xf32>
    %169 = arith.mulf %152, %166 : vector<8x32xf32>
    %170 = arith.mulf %165, %167 : vector<8x32xf32>
    %171 = arith.addf %169, %170 : vector<8x32xf32>
    %172 = math.tanh %171 : vector<8x32xf32>
    %173 = arith.mulf %168, %172 : vector<8x32xf32>
    %c8_i32_38 = arith.constant 8 : i32
    %c0_39 = arith.constant 0 : index
    %c0_40 = arith.constant 0 : index
    %174 = vector.load %arg6[%c0_39, %c0_40] : memref<32x1xf32, #tpu.memory_space<vmem>>, vector<32x1xf32>
    %cst_41 = arith.constant dense<0.000000e+00> : vector<8x1xf32>
    %175 = tpu.matmul %173, %174, %cst_41 {dimension_numbers = #tpu.dot_dimension_numbers<[1], [0], [0], [1], [0, 0, 1, 1], [], []>} : vector<8x32xf32>, vector<32x1xf32>, vector<8x1xf32> -> vector<8x1xf32>
    %c0_42 = arith.constant 0 : index
    %c0_43 = arith.constant 0 : index
    %176 = vector.load %arg2[%c0_42, %c0_43] : memref<8x1xf32, #tpu.memory_space<vmem>>, vector<8x1xf32>
    %c0_44 = arith.constant 0 : index
    %c0_45 = arith.constant 0 : index
    %177 = vector.load %arg7[%c0_44, %c0_45] : memref<1x1xf32, #tpu.memory_space<vmem>>, vector<1x1xf32>
    %178 = vector.broadcast %177 : vector<1x1xf32> to vector<8x1xf32>
    %179 = arith.mulf %176, %178 : vector<8x1xf32>
    %180 = arith.addf %175, %179 : vector<8x1xf32>
    %c0_46 = arith.constant 0 : index
    %c0_47 = arith.constant 0 : index
    %181 = vector.load %arg8[%c0_46, %c0_47] : memref<1x1xf32, #tpu.memory_space<vmem>>, vector<1x1xf32>
    %182 = vector.broadcast %181 : vector<1x1xf32> to vector<8x1xf32>
    %183 = arith.addf %180, %182 : vector<8x1xf32>
    %c0_48 = arith.constant 0 : index
    %c0_49 = arith.constant 0 : index
    %184 = vector.load %arg9[%c0_48, %c0_49] : memref<8x1xf32, #tpu.memory_space<vmem>>, vector<8x1xf32>
    tpu.vector_store %arg9[%c0_48, %c0_49], %183 {strides = array<i32>} : memref<8x1xf32, #tpu.memory_space<vmem>>, vector<8x1xf32>,
    return
  }
  func.func @transform_0(%arg0: i32) -> (i32, i32) {
    %c0_i32 = arith.constant 0 : i32
    %c0_i32_0 = arith.constant 0 : i32
    %c0_i32_1 = arith.constant 0 : i32
    return %c0_i32, %c0_i32_0 : i32, i32
  }
  func.func @transform_1(%arg0: i32) -> (i32, i32) {
    %c0_i32 = arith.constant 0 : i32
    %c0_i32_0 = arith.constant 0 : i32
    %c0_i32_1 = arith.constant 0 : i32
    return %c0_i32, %c0_i32_0 : i32, i32
  }
  func.func @transform_2(%arg0: i32) -> (i32, i32) {
    %c0_i32 = arith.constant 0 : i32
    %c0_i32_0 = arith.constant 0 : i32
    %c0_i32_1 = arith.constant 0 : i32
    return %c0_i32, %c0_i32_0 : i32, i32
  }
  func.func @transform_3(%arg0: i32) -> (i32, i32) {
    %c0_i32 = arith.constant 0 : i32
    %c0_i32_0 = arith.constant 0 : i32
    %c0_i32_1 = arith.constant 0 : i32
    return %c0_i32, %c0_i32_0 : i32, i32
  }
  func.func @transform_4(%arg0: i32) -> (i32, i32) {
    %c0_i32 = arith.constant 0 : i32
    %c0_i32_0 = arith.constant 0 : i32
    %c0_i32_1 = arith.constant 0 : i32
    return %c0_i32, %c0_i32_0 : i32, i32
  }
  func.func @transform_5(%arg0: i32) -> (i32, i32) {
    %c0_i32 = arith.constant 0 : i32
    %c0_i32_0 = arith.constant 0 : i32
    %c0_i32_1 = arith.constant 0 : i32
    return %c0_i32, %c0_i32_0 : i32, i32
  }
  func.func @transform_6(%arg0: i32) -> (i32, i32) {
    %c0_i32 = arith.constant 0 : i32
    %c0_i32_0 = arith.constant 0 : i32
    %c0_i32_1 = arith.constant 0 : i32
    return %c0_i32, %c0_i32_0 : i32, i32
  }
  func.func @transform_7(%arg0: i32) -> (i32, i32) {
    %c0_i32 = arith.constant 0 : i32
    %c0_i32_0 = arith.constant 0 : i32
    %c0_i32_1 = arith.constant 0 : i32
    return %c0_i32, %c0_i32_0 : i32, i32
  }
  func.func @transform_8(%arg0: i32) -> (i32, i32) {
    %c0_i32 = arith.constant 0 : i32
    %c0_i32_0 = arith.constant 0 : i32
    %c0_i32_1 = arith.constant 0 : i32
    return %c0_i32, %c0_i32_0 : i32, i32
  }
}

</mosaic_0001>

<bundles_post_ra>
// kernel: _forward_impl.1
= control target key start
LH: loop header
LB: loop body
LE: loop exit
PB: predicated region body
PF: predicated region fallthrough
CT: control target
= control target key end

     0   :  { %vm74_vm0 = vcmask 1042432   ;;  %vm49_vm1 = vcmask 23552   ;;  %v1318_v0 = vmov 0.0   ;;  %vm1319_vm2 = vmmov 0   ;;  %s1322_s19 = smov 32   ;;  %s1627_s2 = inlined_call_operand.vmem [shape: f32[3,128], index: 2, kind: input, shape index: {}]   ;;  %s1628_s4 = inlined_call_operand.vmem [shape: f32[32,128], index: 4, kind: input, shape index: {}]   ;;  %s1629_s0 = inlined_call_operand.vmem [shape: f32[64,3], index: 0, kind: input, shape index: {}]   ;;  %s1630_s3 = inlined_call_operand.vmem [shape: f32[1,128], index: 3, kind: input, shape index: {}]   ;;  %s1631_s5 = inlined_call_operand.vmem [shape: f32[32,1], index: 5, kind: input, shape index: {}]   ;;  %s1632_s6 = inlined_call_operand.<no memory space> [shape: f32[1,1], index: 6, kind: input, shape index: {}]   ;;  %s1633_s7 = inlined_call_operand.<no memory space> [shape: f32[1,1], index: 7, kind: input, shape index: {}]   ;;  %s1634_s1 = inlined_call_operand.vmem [shape: f32[8,1], index: 1, kind: input, shape index: {}]   ;;  %s1635_s8 = inlined_call_operand.vmem [shape: f32[8,1], index: 8, kind: output, shape index: {}]  }
   0x1   :  { %1182 = vmatprep.subr.mxu1 %v1318_v0  ;;  %v41_v1 = vld [vmem:[%s1627_s2] sm:$0x7]  ;;  %v1375_v2 = vld [vmem:[%s1628_s4 + $0x18] sm:$0xff]  ;;  %1190 = vmatprep.mubr.msk.f32.mxu1 %vm1319_vm2, %v1318_v0  ;;  %v34_v4 = vld [vmem:[%s1629_s0 + $0x8] sm:$0xff]  ;;  %v195_v8 = vlaneseq  ;;  %v1320_v14 = vmov 0.5   ;;  %vm203_vm6 = vcmask 261120  }
   0x2   :  { %v33_v3 = vld [vmem:[%s1629_s0] sm:$0xff]  ;;  %1168 = vmatprep.subr.msk.mxu0 %vm74_vm0, %v41_v1  ;;  %1183 = vmatpush3.msra.mxu1 %v1375_v2  ;;  %v1389_v5 = vld [vmem:[%s1628_s4 + $0x10] sm:$0xff]  ;;  %v1397_v6 = vld [vmem:[%s1628_s4 + $0x8] sm:$0xff]  ;;  %vm1088_vm7 = vcmask 7168  }
   0x3   :  { %1169 = vmatpush3.msk.msra.mxu0 %vm74_vm0, %v41_v1  ;;  %1170 = vmatprep.mubr.msk.f32.mxu0 %vm49_vm1, %v33_v3  ;;  %v1405_v7 = vld [vmem:[%s1628_s4] sm:$0xff]  ;;  %v196_v9 = vand.u32 127, %v195_v8  ;;  %v35_v46 = vld [vmem:[%s1629_s0 + $0x10] sm:$0xff]  ;;  %v36_v47 = vld [vmem:[%s1629_s0 + $0x18] sm:$0xff] }
   0x4   :  { %1184 = vmatprep.subr.mxu1 %v1318_v0  ;;  %1171 = vmatmul.mubr.msk.f32.vlgmr.msra.gmra.mxu0 %vm49_vm1, %v34_v4  ;;  %v1433_v11 = vld [vmem:[%s1630_s3] ss:$0 sm:$0xff]  ;;  %s1321_s3 = smov 64   ;;  %v38_v49 = vld [vmem:[%s1629_s0 + $0x28] sm:$0xff]  ;;  %v39_v50 = vld [vmem:[%s1629_s0 + $0x30] sm:$0xff] }
   0x5   :  { %1185 = vmatpush3.msra.mxu1 %v1389_v5  ;;  %1204 = vmatprep.subr.mxu0 %v1318_v0  ;;  %vm197_vm3 = vcmp.ge.s32.totalorder %v196_v9, 64  ;;  %vm198_vm4 = vcmp.lt.s32.totalorder %v196_v9, 96  ;;  %v37_v48 = vld [vmem:[%s1629_s0 + $0x20] sm:$0xff]  ;;  %v40_v51 = vld [vmem:[%s1629_s0 + $0x38] sm:$0xff] }
   0x6   :  { %1186 = vmatprep.subr.mxu1 %v1318_v0  ;;  %1205 = vmatpush3.msra.mxu0 %v1375_v2  ;;  %vm199_vm5 = vmand %vm197_vm3, %vm198_vm4 }
   0x7   :  { %1187 = vmatpush3.msra.mxu1 %v1397_v6  ;;  %1206 = vmatprep.subr.mxu0 %v1318_v0  ;;  %v1436_v15 = vsel %vm199_vm5, 1.0, %v1320_v14  ;;  %v1439_v21 = vsel %vm199_vm5, 0.0, %v1320_v14 }
   0x8   :  { %1188 = vmatprep.subr.mxu1 %v1318_v0  ;;  %1207 = vmatpush3.msra.mxu0 %v1389_v5 }
   0x9   :  { %1189 = vmatpush3.msra.mxu1 %v1405_v7  ;;  %1208 = vmatprep.subr.mxu0 %v1318_v0 }
   0xa   :  { %1191 = vmatmul.mubr.f32.vlgmr.msra.gmra.mxu1 %v1318_v0  ;;  %1193 = vmatprep.subr.mxu1 %v1318_v0 }
   0xb   :  { %1194 = vmatpush3.msra.mxu1 %v1375_v2  ;;  %1201 = vmatprep.mubr.msk.f32.mxu1 %vm1319_vm2, %v1318_v0 }
   0xc   :  { %1195 = vmatprep.subr.mxu1 %v1318_v0  ;;  %1209 = vmatpush3.msra.mxu0 %v1397_v6 }
   0xd   :  { %1196 = vmatpush3.msra.mxu1 %v1389_v5  ;;  %1210 = vmatprep.subr.mxu0 %v1318_v0 }
   0xe   :  { %1197 = vmatprep.subr.mxu1 %v1318_v0  ;;  %1211 = vmatpush3.msra.mxu0 %v1405_v7 }
   0xf   :  { %1198 = vmatpush3.msra.mxu1 %v1397_v6  ;;  %1226 = vmatprep.subr.mxu0 %v1318_v0 }
  0x10   :  { %1199 = vmatprep.subr.mxu1 %v1318_v0  ;;  %1173 = vmatprep.mubr.msk.f32.mxu0 %vm49_vm1, %v35_v46 }
  0x11   :  { %1200 = vmatpush3.msra.mxu1 %v1405_v7  ;;  %1174 = vmatmul.mubr.msk.f32.gmra.mxu0 %vm49_vm1, %v36_v47 }
  0x12   :  { %1215 = vmatprep.subr.mxu1 %v1318_v0  ;;  %1176 = vmatprep.mubr.msk.f32.mxu0 %vm49_vm1, %v37_v48 }
  0x15   :  { %1177 = vmatmul.mubr.msk.f32.gmra.mxu0 %vm49_vm1, %v38_v49 }
  0x16   :  { %1179 = vmatprep.mubr.msk.f32.mxu0 %vm49_vm1, %v39_v50 }
  0x19   :  { %1180 = vmatmul.mubr.msk.f32.gmra.mxu0 %vm49_vm1, %v40_v51 }
  0x1a   :  { %1212 = vmatprep.mubr.msk.f32.mxu0 %vm1319_vm2, %v1318_v0 }
  0xc4   :  { %v1172_v10 = vpop.f32.mrf.mxu0 }
  0xc5   :  { %v150_v33 = vadd.f32 %v1172_v10, %v1433_v11 }
  0xc6   :  { %v144_v12 = vpop.f32.mrf.mxu0 }
  0xc7   :  { %v145_v13 = vadd.f32 %v1433_v11, %v144_v12 }
  0xca   :  { %v273_v16 = vpop.f32.mrf.mxu1 }
  0xcb   :  { %v277_v17 = vadd.f32 %v273_v16, %v145_v13 }
  0xcc   :  { %v1192_v18 = vpop.f32.mrf.mxu1 }
  0xcd   :  { %v278_v19 = vmul.f32 %v277_v17, %v1436_v15 }
  0xcf   :  { %1286 = vtanh.f32 %v278_v19 }
  0xd1   :  { %v1175_v56 = vpop.f32.mrf.mxu0 }
  0xd3   :  { %v154_v57 = vpop.f32.mrf.mxu0 }
  0xd4   :  { %v155_v62 = vadd.f32 %v1433_v11, %v154_v57 }
  0xd5   :  { %v1503_v58 = vpop.f32.mrf.mxu0 }
  0xd6   :  { %v170_v57 = vadd.f32 %v1503_v58, %v1433_v11 }
  0xd7   :  { %v1505_v59 = vpop.f32.mrf.mxu0 }
  0xd9   :  { %v1507_v60 = vpop.f32.mrf.mxu0 }
  0xdb   :  { %v1509_v61 = vpop.f32.mrf.mxu0 }
  0xdc   :  { %v1287_v20 = vpop.eup %1286 }
  0xdd   :  { %v280_v22 = vmul.f32 %v1287_v20, %v1436_v15 }
  0xdf   :  { %v281_v23 = vadd.f32 %v280_v22, %v1439_v21 }
  0xe1   :  { %284 = vrot.lane.b32.xlu0 %v281_v23, %s1321_s3  ;;  %v282_v26 = vmul.f32 0.0, %v281_v23 }
 0x153   :  { %v285_v24 = vpop.permute.xlu0 %284 }
 0x154   :  { %v287_v25 = vmul.f32 %v285_v24, %v281_v23 }
 0x156   :  { %289 = vrot.lane.b32.xlu0 %v287_v25, %s1322_s19 }
 0x1c8   :  { %v290_v27 = vpop.permute.xlu0 %289 }
 0x1c9   :  { %v292_v28 = vadd.f32 %v290_v27, %v282_v26 }
 0x1cb   :  { %1288 = vtanh.f32 %v292_v28 }
 0x1d8   :  { %v1289_v29 = vpop.eup %1288 }
 0x1d9   :  { %295 = vrot.lane.b32.xlu1 %v1289_v29, %s1321_s3 }
 0x24b   :  { %v296_v30 = vpop.permute.xlu1 %295 }
 0x24c   :  { %v298_v31 = vmul.f32 %v296_v30, %v281_v23  ;;  %v160_v23 = vadd.f32 %v1175_v56, %v1433_v11 }
 0x24e   :  { %302 = vrot.lane.b32.xlu1 %v298_v31, %s1322_s19 }
 0x2c0   :  { %v303_v32 = vpop.permute.xlu1 %302 }
 0x2c1   :  { %1202 = vmatmul.mubr.msk.f32.vlgmr.msra.gmra.mxu1 %vm203_vm6, %v303_v32 }
 0x2c2   :  { %1216 = vmatpush3.msra.mxu1 %v1375_v2  ;;  %1223 = vmatprep.mubr.msk.f32.mxu1 %vm1319_vm2, %v1318_v0 }
 0x2c3   :  { %1217 = vmatprep.subr.mxu1 %v1318_v0 }
 0x2c4   :  { %1218 = vmatpush3.msra.mxu1 %v1389_v5 }
 0x2c5   :  { %1219 = vmatprep.subr.mxu1 %v1318_v0 }
 0x2c6   :  { %1220 = vmatpush3.msra.mxu1 %v1397_v6 }
 0x2c7   :  { %1221 = vmatprep.subr.mxu1 %v1318_v0 }
 0x2c8   :  { %1222 = vmatpush3.msra.mxu1 %v1405_v7 }
 0x2c9   :  { %1237 = vmatprep.subr.mxu1 %v1318_v0 }
 0x381   :  { %v372_v34 = vpop.f32.mrf.mxu1 }
 0x382   :  { %v376_v35 = vadd.f32 %v372_v34, %v150_v33 }
 0x383   :  { %v1203_v36 = vpop.f32.mrf.mxu1 }
 0x384   :  { %v377_v37 = vmul.f32 %v376_v35, %v1436_v15 }
 0x386   :  { %1290 = vtanh.f32 %v377_v37 }
 0x393   :  { %v1291_v38 = vpop.eup %1290 }
 0x394   :  { %v379_v39 = vmul.f32 %v1291_v38, %v1436_v15 }
 0x396   :  { %v380_v40 = vadd.f32 %v379_v39, %v1439_v21 }
 0x398   :  { %383 = vrot.lane.b32.xlu0 %v380_v40, %s1321_s3  ;;  %v381_v43 = vmul.f32 %v380_v40, %v292_v28 }
 0x40a   :  { %v384_v41 = vpop.permute.xlu0 %383 }
 0x40b   :  { %v386_v42 = vmul.f32 %v384_v41, %v380_v40 }
 0x40d   :  { %388 = vrot.lane.b32.xlu1 %v386_v42, %s1322_s19 }
 0x47f   :  { %v389_v44 = vpop.permute.xlu1 %388 }
 0x480   :  { %v391_v45 = vadd.f32 %v389_v44, %v381_v43 }
 0x482   :  { %1292 = vtanh.f32 %v391_v45 }
 0x48f   :  { %v1293_v52 = vpop.eup %1292 }
 0x490   :  { %394 = vrot.lane.b32.xlu0 %v1293_v52, %s1321_s3 }
 0x502   :  { %v395_v53 = vpop.permute.xlu0 %394 }
 0x503   :  { %v397_v54 = vmul.f32 %v395_v53, %v380_v40  ;;  %v165_v40 = vadd.f32 %v1433_v11, %v1505_v59 }
 0x505   :  { %401 = vrot.lane.b32.xlu1 %v397_v54, %s1322_s19 }
 0x577   :  { %v402_v55 = vpop.permute.xlu1 %401 }
 0x578   :  { %1213 = vmatmul.mubr.msk.f32.vlgmr.msra.gmra.mxu0 %vm203_vm6, %v402_v55 }
 0x579   :  { %1227 = vmatpush3.msra.mxu0 %v1375_v2  ;;  %1234 = vmatprep.mubr.msk.f32.mxu0 %vm1319_vm2, %v1318_v0 }
 0x57a   :  { %1228 = vmatprep.subr.mxu0 %v1318_v0 }
 0x57b   :  { %1229 = vmatpush3.msra.mxu0 %v1389_v5 }
 0x57c   :  { %1230 = vmatprep.subr.mxu0 %v1318_v0 }
 0x57d   :  { %1231 = vmatpush3.msra.mxu0 %v1397_v6 }
 0x57e   :  { %1232 = vmatprep.subr.mxu0 %v1318_v0 }
 0x57f   :  { %1233 = vmatpush3.msra.mxu0 %v1405_v7 }
 0x580   :  { %1248 = vmatprep.subr.mxu0 %v1318_v0 }
 0x638   :  { %v471_v63 = vpop.f32.mrf.mxu0 }
 0x639   :  { %v475_v1 = vadd.f32 %v471_v63, %v155_v62 }
 0x63a   :  { %v1214_v3 = vpop.f32.mrf.mxu0 }
 0x63b   :  { %v476_v4 = vmul.f32 %v475_v1, %v1436_v15 }
 0x63d   :  { %1294 = vtanh.f32 %v476_v4 }
 0x64a   :  { %v1295_v8 = vpop.eup %1294 }
 0x64b   :  { %v478_v9 = vmul.f32 %v1295_v8, %v1436_v15 }
 0x64d   :  { %v479_v10 = vadd.f32 %v478_v9, %v1439_v21 }
 0x64f   :  { %482 = vrot.lane.b32.xlu0 %v479_v10, %s1321_s3  ;;  %v480_v14 = vmul.f32 %v479_v10, %v391_v45 }
 0x6c1   :  { %v483_v12 = vpop.permute.xlu0 %482 }
 0x6c2   :  { %v485_v13 = vmul.f32 %v483_v12, %v479_v10 }
 0x6c4   :  { %487 = vrot.lane.b32.xlu1 %v485_v13, %s1322_s19 }
 0x736   :  { %v488_v16 = vpop.permute.xlu1 %487 }
 0x737   :  { %v490_v17 = vadd.f32 %v488_v16, %v480_v14  ;;  %v175_v14 = vadd.f32 %v1433_v11, %v1509_v61 }
 0x739   :  { %1296 = vtanh.f32 %v490_v17 }
 0x746   :  { %v1297_v18 = vpop.eup %1296 }
 0x747   :  { %493 = vrot.lane.b32.xlu0 %v1297_v18, %s1321_s3 }
 0x7b9   :  { %v494_v19 = vpop.permute.xlu0 %493 }
 0x7ba   :  { %v496_v20 = vmul.f32 %v494_v19, %v479_v10 }
 0x7bc   :  { %500 = vrot.lane.b32.xlu1 %v496_v20, %s1322_s19 }
 0x82e   :  { %v501_v22 = vpop.permute.xlu1 %500 }
 0x82f   :  { %1224 = vmatmul.mubr.msk.f32.vlgmr.msra.gmra.mxu1 %vm203_vm6, %v501_v22 }
 0x830   :  { %1238 = vmatpush3.msra.mxu1 %v1375_v2  ;;  %1245 = vmatprep.mubr.msk.f32.mxu1 %vm1319_vm2, %v1318_v0 }
 0x831   :  { %1239 = vmatprep.subr.mxu1 %v1318_v0 }
 0x832   :  { %1240 = vmatpush3.msra.mxu1 %v1389_v5 }
 0x833   :  { %1241 = vmatprep.subr.mxu1 %v1318_v0 }
 0x834   :  { %1242 = vmatpush3.msra.mxu1 %v1397_v6 }
 0x835   :  { %1243 = vmatprep.subr.mxu1 %v1318_v0 }
 0x836   :  { %1244 = vmatpush3.msra.mxu1 %v1405_v7 }
 0x837   :  { %1259 = vmatprep.subr.mxu1 %v1318_v0 }
 0x8ef   :  { %v570_v24 = vpop.f32.mrf.mxu1 }
 0x8f0   :  { %v574_v25 = vadd.f32 %v570_v24, %v160_v23 }
 0x8f1   :  { %v1225_v26 = vpop.f32.mrf.mxu1 }
 0x8f2   :  { %v575_v27 = vmul.f32 %v574_v25, %v1436_v15 }
 0x8f4   :  { %1298 = vtanh.f32 %v575_v27 }
 0x901   :  { %v1299_v28 = vpop.eup %1298 }
 0x902   :  { %v577_v29 = vmul.f32 %v1299_v28, %v1436_v15 }
 0x904   :  { %v578_v30 = vadd.f32 %v577_v29, %v1439_v21 }
 0x906   :  { %581 = vrot.lane.b32.xlu0 %v578_v30, %s1321_s3  ;;  %v579_v33 = vmul.f32 %v578_v30, %v490_v17 }
 0x978   :  { %v582_v31 = vpop.permute.xlu0 %581 }
 0x979   :  { %v584_v32 = vmul.f32 %v582_v31, %v578_v30 }
 0x97b   :  { %586 = vrot.lane.b32.xlu1 %v584_v32, %s1322_s19  ;;  %v180_v32 = vadd.f32 %v1507_v60, %v1433_v11  ;;  %v995_v60 = vld [vmem:[%s1631_s5 + $0x18] sm:$0xff] }
 0x9ed   :  { %v587_v34 = vpop.permute.xlu1 %586 }
 0x9ee   :  { %v589_v35 = vadd.f32 %v587_v34, %v579_v33 }
 0x9f0   :  { %1300 = vtanh.f32 %v589_v35 }
 0x9fd   :  { %v1301_v36 = vpop.eup %1300 }
 0x9fe   :  { %592 = vrot.lane.b32.xlu0 %v1301_v36, %s1321_s3 }
 0xa70   :  { %v593_v37 = vpop.permute.xlu0 %592 }
 0xa71   :  { %v595_v38 = vmul.f32 %v593_v37, %v578_v30 }
 0xa73   :  { %599 = vrot.lane.b32.xlu1 %v595_v38, %s1322_s19 }
 0xae5   :  { %v600_v39 = vpop.permute.xlu1 %599 }
 0xae6   :  { %1235 = vmatmul.mubr.msk.f32.vlgmr.msra.gmra.mxu0 %vm203_vm6, %v600_v39 }
 0xae7   :  { %1249 = vmatpush3.msra.mxu0 %v1375_v2  ;;  %1256 = vmatprep.mubr.msk.f32.mxu0 %vm1319_vm2, %v1318_v0 }
 0xae8   :  { %1250 = vmatprep.subr.mxu0 %v1318_v0 }
 0xae9   :  { %1251 = vmatpush3.msra.mxu0 %v1389_v5 }
 0xaea   :  { %1252 = vmatprep.subr.mxu0 %v1318_v0 }
 0xaeb   :  { %1253 = vmatpush3.msra.mxu0 %v1397_v6 }
 0xaec   :  { %1254 = vmatprep.subr.mxu0 %v1318_v0 }
 0xaed   :  { %1255 = vmatpush3.msra.mxu0 %v1405_v7 }
 0xaee   :  { %1270 = vmatprep.subr.mxu0 %v1318_v0 }
 0xba6   :  { %v669_v41 = vpop.f32.mrf.mxu0 }
 0xba7   :  { %v673_v42 = vadd.f32 %v669_v41, %v165_v40 }
 0xba8   :  { %v1236_v43 = vpop.f32.mrf.mxu0 }
 0xba9   :  { %v674_v44 = vmul.f32 %v673_v42, %v1436_v15 }
 0xbab   :  { %1302 = vtanh.f32 %v674_v44  ;;  %v992_v44 = vld [vmem:[%s1631_s5] sm:$0xff] }
 0xbb8   :  { %v1303_v45 = vpop.eup %1302 }
 0xbb9   :  { %v676_v46 = vmul.f32 %v1303_v45, %v1436_v15 }
 0xbbb   :  { %v677_v47 = vadd.f32 %v676_v46, %v1439_v21  ;;  %v13_v46 = vstv %s1632_s6 }
 0xbbc   :  { %14 = vst [vmem:[#allocation3] sm:$0x1] %v13_v46 }
 0xbbd   :  { %680 = vrot.lane.b32.xlu0 %v677_v47, %s1321_s3  ;;  %v678_v50 = vmul.f32 %v677_v47, %v589_v35 }
 0xc2f   :  { %v681_v48 = vpop.permute.xlu0 %680 }
 0xc30   :  { %v683_v49 = vmul.f32 %v681_v48, %v677_v47 }
 0xc32   :  { %685 = vrot.lane.b32.xlu1 %v683_v49, %s1322_s19 }
 0xca4   :  { %v686_v51 = vpop.permute.xlu1 %685 }
 0xca5   :  { %v688_v52 = vadd.f32 %v686_v51, %v678_v50  ;;  %v1111_v51 = vld [vmem:[#allocation3] ss:$0 sm:$0xff] }
 0xca7   :  { %1304 = vtanh.f32 %v688_v52 }
 0xcb4   :  { %v1305_v53 = vpop.eup %1304 }
 0xcb5   :  { %691 = vrot.lane.b32.xlu0 %v1305_v53, %s1321_s3 }
 0xd27   :  { %v692_v54 = vpop.permute.xlu0 %691 }
 0xd28   :  { %v694_v55 = vmul.f32 %v692_v54, %v677_v47  ;;  %v15_v47 = vstv %s1633_s7 }
 0xd29   :  { %16 = vst [vmem:[#allocation4] sm:$0x1] %v15_v47 }
 0xd2a   :  { %698 = vrot.lane.b32.xlu1 %v694_v55, %s1322_s19 }
 0xd30   :  { %v1113_v54 = vld [vmem:[#allocation4] ss:$0 sm:$0xff] }
 0xd9c   :  { %v699_v56 = vpop.permute.xlu1 %698 }
 0xd9d   :  { %1246 = vmatmul.mubr.msk.f32.vlgmr.msra.gmra.mxu1 %vm203_vm6, %v699_v56 }
 0xd9e   :  { %1260 = vmatpush3.msra.mxu1 %v1375_v2  ;;  %1267 = vmatprep.mubr.msk.f32.mxu1 %vm1319_vm2, %v1318_v0 }
 0xd9f   :  { %1261 = vmatprep.subr.mxu1 %v1318_v0 }
 0xda0   :  { %1262 = vmatpush3.msra.mxu1 %v1389_v5 }
 0xda1   :  { %1263 = vmatprep.subr.mxu1 %v1318_v0 }
 0xda2   :  { %1264 = vmatpush3.msra.mxu1 %v1397_v6 }
 0xda3   :  { %1265 = vmatprep.subr.mxu1 %v1318_v0 }
 0xda4   :  { %1266 = vmatpush3.msra.mxu1 %v1405_v7 }
 0xe5d   :  { %v768_v59 = vpop.f32.mrf.mxu1 }
 0xe5e   :  { %v772_v2 = vadd.f32 %v768_v59, %v170_v57 }
 0xe5f   :  { %v1247_v62 = vpop.f32.mrf.mxu1 }
 0xe60   :  { %v773_v63 = vmul.f32 %v772_v2, %v1436_v15 }
 0xe62   :  { %1306 = vtanh.f32 %v773_v63 }
 0xe6f   :  { %v1307_v1 = vpop.eup %1306 }
 0xe70   :  { %v775_v5 = vmul.f32 %v1307_v1, %v1436_v15 }
 0xe72   :  { %v776_v3 = vadd.f32 %v775_v5, %v1439_v21 }
 0xe74   :  { %779 = vrot.lane.b32.xlu0 %v776_v3, %s1321_s3  ;;  %v777_v7 = vmul.f32 %v776_v3, %v688_v52 }
 0xee6   :  { %v780_v6 = vpop.permute.xlu0 %779 }
 0xee7   :  { %v782_v4 = vmul.f32 %v780_v6, %v776_v3 }
 0xee9   :  { %784 = vrot.lane.b32.xlu1 %v782_v4, %s1322_s19 }
 0xf5b   :  { %v785_v8 = vpop.permute.xlu1 %784 }
 0xf5c   :  { %v787_v58 = vadd.f32 %v785_v8, %v777_v7 }
 0xf5e   :  { %1308 = vtanh.f32 %v787_v58 }
 0xf6b   :  { %v1309_v9 = vpop.eup %1308 }
 0xf6c   :  { %790 = vrot.lane.b32.xlu0 %v1309_v9, %s1321_s3 }
 0xfde   :  { %v791_v10 = vpop.permute.xlu0 %790 }
 0xfdf   :  { %v793_v12 = vmul.f32 %v791_v10, %v776_v3 }
 0xfe1   :  { %797 = vrot.lane.b32.xlu1 %v793_v12, %s1322_s19 }
0x1053   :  { %v798_v13 = vpop.permute.xlu1 %797 }
0x1054   :  { %1257 = vmatmul.mubr.msk.f32.vlgmr.msra.gmra.mxu0 %vm203_vm6, %v798_v13 }
0x1055   :  { %1278 = vmatprep.mubr.msk.f32.mxu0 %vm1319_vm2, %v1318_v0  ;;  %1271 = vmatpush3.msra.mxu0 %v995_v60 }
0x1056   :  { %1272 = vmatprep.subr.mxu0 %v1318_v0 }
0x1114   :  { %v867_v16 = vpop.f32.mrf.mxu0 }
0x1115   :  { %v871_v17 = vadd.f32 %v867_v16, %v175_v14 }
0x1116   :  { %v1258_v18 = vpop.f32.mrf.mxu0 }
0x1117   :  { %v872_v19 = vmul.f32 %v871_v17, %v1436_v15 }
0x1119   :  { %1310 = vtanh.f32 %v872_v19 }
0x1126   :  { %v1311_v20 = vpop.eup %1310 }
0x1127   :  { %v874_v22 = vmul.f32 %v1311_v20, %v1436_v15 }
0x1129   :  { %v875_v23 = vadd.f32 %v874_v22, %v1439_v21 }
0x112b   :  { %878 = vrot.lane.b32.xlu0 %v875_v23, %s1321_s3  ;;  %v876_v26 = vmul.f32 %v875_v23, %v787_v58 }
0x119d   :  { %v879_v24 = vpop.permute.xlu0 %878 }
0x119e   :  { %v881_v25 = vmul.f32 %v879_v24, %v875_v23 }
0x11a0   :  { %883 = vrot.lane.b32.xlu1 %v881_v25, %s1322_s19 }
0x1212   :  { %v884_v27 = vpop.permute.xlu1 %883 }
0x1213   :  { %v886_v61 = vadd.f32 %v884_v27, %v876_v26 }
0x1215   :  { %1312 = vtanh.f32 %v886_v61 }
0x1222   :  { %v1313_v28 = vpop.eup %1312 }
0x1223   :  { %889 = vrot.lane.b32.xlu0 %v1313_v28, %s1321_s3 }
0x1295   :  { %v890_v29 = vpop.permute.xlu0 %889 }
0x1296   :  { %v892_v30 = vmul.f32 %v890_v29, %v875_v23 }
0x1298   :  { %896 = vrot.lane.b32.xlu1 %v892_v30, %s1322_s19 }
0x130a   :  { %v897_v31 = vpop.permute.xlu1 %896 }
0x130b   :  { %1268 = vmatmul.mubr.msk.f32.vlgmr.msra.gmra.mxu1 %vm203_vm6, %v897_v31 }
0x13cb   :  { %v966_v33 = vpop.f32.mrf.mxu1 }
0x13cc   :  { %v970_v34 = vadd.f32 %v966_v33, %v180_v32 }
0x13cd   :  { %v1269_v35 = vpop.f32.mrf.mxu1 }
0x13ce   :  { %v971_v36 = vmul.f32 %v970_v34, %v1436_v15 }
0x13d0   :  { %1314 = vtanh.f32 %v971_v36 }
0x13dd   :  { %v1315_v37 = vpop.eup %1314 }
0x13de   :  { %v973_v38 = vmul.f32 %v1315_v37, %v1436_v15  ;;  %v994_v15 = vld [vmem:[%s1631_s5 + $0x10] sm:$0xff] }
0x13df   :  { %1273 = vmatpush3.msra.mxu0 %v994_v15 }
0x13e0   :  { %v974_v39 = vadd.f32 %v973_v38, %v1439_v21  ;;  %v993_v21 = vld [vmem:[%s1631_s5 + $0x8] sm:$0xff]  ;;  %1274 = vmatprep.subr.mxu0 %v1318_v0 }
0x13e1   :  { %1275 = vmatpush3.msra.mxu0 %v993_v21 }
0x13e2   :  { %977 = vrot.lane.b32.xlu0 %v974_v39, %s1321_s3  ;;  %v975_v42 = vmul.f32 %v974_v39, %v886_v61  ;;  %1276 = vmatprep.subr.mxu0 %v1318_v0  ;;  %v996_v0 = vld [vmem:[%s1634_s1] sm:$0xff] }
0x13e3   :  { %1277 = vmatpush3.msra.mxu0 %v992_v44  ;;  %v1004_v52 = vmul.f32 %v1111_v51, %v996_v0 }
0x1454   :  { %v978_v40 = vpop.permute.xlu0 %977 }
0x1455   :  { %v980_v41 = vmul.f32 %v978_v40, %v974_v39 }
0x1457   :  { %982 = vrot.lane.b32.xlu1 %v980_v41, %s1322_s19 }
0x14c9   :  { %v983_v43 = vpop.permute.xlu1 %982 }
0x14ca   :  { %v985_v11 = vadd.f32 %v983_v43, %v975_v42 }
0x14cc   :  { %1316 = vtanh.f32 %v985_v11 }
0x14d9   :  { %v1317_v45 = vpop.eup %1316 }
0x14da   :  { %988 = vrot.lane.b32.xlu0 %v1317_v45, %s1321_s3 }
0x154c   :  { %v989_v48 = vpop.permute.xlu0 %988 }
0x154d   :  { %v991_v49 = vmul.f32 %v989_v48, %v974_v39 }
0x154f   :  { %1006 = vrot.lane.b32.xlu1 %v991_v49, %s1322_s19 }
0x15c1   :  { %v1007_v50 = vpop.permute.xlu1 %1006 }
0x15c2   :  { %1279 = vmatmul.mubr.msk.f32.vlgmr.msra.gmra.mxu0 %vm203_vm6, %v1007_v50 }
0x1682   :  { %v1076_v53 = vpop.f32.mrf.mxu0 }
0x1683   :  { %v1077_v55 = vadd.f32 %v1076_v53, %v1004_v52 }
0x1684   :  { %v1280_v56 = vpop.f32.mrf.mxu0 }
0x1685   :  { %v1087_v57 = vadd.f32 %v1113_v54, %v1077_v55 }
0x1687   :  { %1089 = vst.msk [vmem:[%s1635_s8] sm:$0xff] %vm1088_vm7, %v1087_v57 }

</bundles_post_ra>
